<compile_context>
chip_gen: v7x
topology: tpu7x:2x2x1
jax: 0.10.0
libtpu: 0.0.40
codegen_flags: <defaults>
</compile_context>

<pallas_src>
import functools

import jax
import jax.numpy as jnp
import numpy as np
from jax.experimental import pallas as pl
from jax.experimental.pallas import tpu as pltpu

_NEG_BIG = -1e30  # finite stand-in for -inf (keeps padded/masked columns NaN-free)


def _pick_tile(n, max_tile=8192):
    """Return (padded_n, lane_tile): tile % 128 == 0, tile | padded_n, padded_n >= n."""
    # Exact fit with a big lane tile (no padding) -- scan multiples of 128 downward.
    for t in range(max_tile, 1024 - 1, -128):
        if n % t == 0:
            return n, t
    # Small N: one (possibly tail-padded) tile.
    npad = -(-n // 128) * 128
    if npad <= max_tile:
        return npad, npad
    # Awkward large N: 1024-wide tiles + a padded tail tile (masked in-kernel).
    t = min(1024, max_tile)
    return -(-n // t) * t, t


def _choose_blocking(B, C, N, itemsize):
    """Pick (padded_n, lane_tile, batch_block) under a conservative VMEM budget."""
    budget = 12 * 1024 * 1024  # double-buffered logits stream budget (fits v5e/v7x)
    max_tile = 8192
    while max_tile > 512 and 2 * C * max_tile * itemsize > budget:
        max_tile //= 2
    npad, tn = _pick_tile(N, max_tile)
    bb = 1
    for cand in (4, 2):
        if cand <= B and B % cand == 0 and 2 * cand * C * tn * itemsize <= budget:
            bb = cand
            break
    return npad, tn, bb


def _ce_kernel(*refs, n_valid, needs_tail, ignore_zero, has_mask):
    """Cross-entropy over the class (sublane) axis, accumulated over point tiles.

    refs (has_mask=True):  logits (Bb,C,TN), labels (Bb,1,TN) i32, mask (Bb,C,1) f32,
                           out_sum (1,1,128) f32, out_cnt (1,1,128) f32,
                           sum_sc (1,TN) f32, cnt_sc (1,TN) f32
    refs (has_mask=False): same without the mask ref.
    """
    if has_mask:
        logits_ref, labels_ref, mask_ref, out_sum_ref, out_cnt_ref, sum_sc, cnt_sc = refs
    else:
        logits_ref, labels_ref, out_sum_ref, out_cnt_ref, sum_sc, cnt_sc = refs
        mask_ref = None

    j = pl.program_id(2)

    @pl.when(j == 0)
    def _():
        sum_sc[...] = jnp.zeros_like(sum_sc)
        cnt_sc[...] = jnp.zeros_like(cnt_sc)

    x = logits_ref[...]                  # (Bb, C, TN) native dtype (bf16 stays bf16)
    labels = labels_ref[...]             # (Bb, 1, TN) int32
    bb, c, tn = x.shape

    if has_mask:
        # torch: x[~mask, :] = -inf ; finite sentinel keeps padding NaN-free.
        x = jnp.where(mask_ref[...] > 0.0, x, jnp.asarray(_NEG_BIG, x.dtype))

    # Elementwise max/shift in the logits' dtype; exp & accumulation in f32.
    m = jnp.max(x, axis=1, keepdims=True)                               # (Bb, 1, TN)
    xs = (x - m).astype(jnp.float32)                                    # (Bb, C, TN)

    lse_s = jnp.log(jnp.sum(jnp.exp(xs), axis=1, keepdims=True))        # (Bb, 1, TN)

    # One-hot pick via a (1, C, 1) sublane iota broadcast against the labels.
    cls_idx = jax.lax.broadcasted_iota(jnp.int32, (1, c, 1), 1)         # (1, C, 1)
    picked_s = jnp.sum(jnp.where(cls_idx == labels, xs, 0.0),
                       axis=1, keepdims=True)                           # (Bb, 1, TN)

    loss = lse_s - picked_s                                             # (Bb, 1, TN)

    valid = None
    if ignore_zero:
        valid = labels != 0                                             # (Bb, 1, TN)
    if needs_tail:
        base = (pl.program_id(1) * pl.num_programs(2) + j) * tn
        gcol = base + jax.lax.broadcasted_iota(jnp.int32, (1, 1, tn), 2)
        tail = gcol < n_valid                                           # (1, 1, TN)
        valid = tail if valid is None else (valid & tail)

    if valid is None:
        sum_sc[...] = sum_sc[...] + jnp.sum(loss, axis=0)
        cnt_sc[...] = cnt_sc[...] + jnp.full(cnt_sc.shape, float(bb), jnp.float32)
    else:
        valid = jnp.broadcast_to(valid, loss.shape)
        sum_sc[...] = sum_sc[...] + jnp.sum(jnp.where(valid, loss, 0.0), axis=0)
        cnt_sc[...] = cnt_sc[...] + jnp.sum(valid.astype(jnp.float32), axis=0)

    @pl.when(j == pl.num_programs(2) - 1)
    def _():
        out_sum_ref[...] = jnp.zeros(out_sum_ref.shape, jnp.float32) + jnp.sum(sum_sc[...])
        out_cnt_ref[...] = jnp.zeros(out_cnt_ref.shape, jnp.float32) + jnp.sum(cnt_sc[...])


def _cross_entropy_bcn(logits, labels, *, mask=None, ignore_index0=True):
    """Mean cross-entropy for logits (B, C, N) and int labels (B, N).

    ignore_index0=True excludes points with label == 0 (F.cross_entropy ignore_index=0).
    mask (optional): (B, C) -- classes with mask==0 get -inf logits (torch masked path).
    NOTE: if every label is ignored the result is NaN (0/0), matching PyTorch.
    Feed bf16 logits for ~2x less HBM traffic; the kernel passes the dtype through.
    """
    B, C, N = logits.shape
    itemsize = jnp.dtype(logits.dtype).itemsize
    npad, tn, bb = _choose_blocking(B, C, N, itemsize)

    x3 = logits                                          # native dtype pass-through
    y3 = labels.astype(jnp.int32).reshape(B, 1, N)
    if npad != N:                                        # tail pad only
        x3 = jnp.pad(x3, ((0, 0), (0, 0), (0, npad - N)))
        y3 = jnp.pad(y3, ((0, 0), (0, 0), (0, npad - N)))

    nb = B // bb
    jt = npad // tn
    # Keep both v7x TensorCores busy when the batch collapses to one block:
    # split the point axis into two parallel halves instead.
    nsplit = 2 if (nb == 1 and jt >= 2 and jt % 2 == 0) else 1
    jps = jt // nsplit

    has_mask = mask is not None
    kernel = functools.partial(_ce_kernel, n_valid=N, needs_tail=(npad != N),
                               ignore_zero=ignore_index0, has_mask=has_mask)

    in_specs = [
        pl.BlockSpec((bb, C, tn), lambda b, s, j: (b, 0, s * jps + j)),   # logits
        pl.BlockSpec((bb, 1, tn), lambda b, s, j: (b, 0, s * jps + j)),   # labels
    ]
    inputs = [x3, y3]
    if has_mask:
        in_specs.append(pl.BlockSpec((bb, C, 1), lambda b, s, j: (b, 0, 0)))
        inputs.append(mask.astype(jnp.float32).reshape(B, C, 1))

    sums, cnts = pl.pallas_call(
        kernel,
        out_shape=(jax.ShapeDtypeStruct((nb * nsplit, 1, 128), jnp.float32),
                   jax.ShapeDtypeStruct((nb * nsplit, 1, 128), jnp.float32)),
        grid_spec=pltpu.PrefetchScalarGridSpec(
            num_scalar_prefetch=0,
            grid=(nb, nsplit, jps),
            in_specs=in_specs,
            out_specs=[
                pl.BlockSpec((1, 1, 128), lambda b, s, j: (b * nsplit + s, 0, 0)),
                pl.BlockSpec((1, 1, 128), lambda b, s, j: (b * nsplit + s, 0, 0)),
            ],
            scratch_shapes=[
                pltpu.VMEM((1, tn), jnp.float32),   # per-lane loss accumulator
                pltpu.VMEM((1, tn), jnp.float32),   # per-lane valid-count accumulator
            ],
        ),
        compiler_params=pltpu.CompilerParams(
            dimension_semantics=("parallel", "parallel", "arbitrary"),
            vmem_limit_bytes=32 * 1024 * 1024,
        ),
    )(*inputs)

    return jnp.sum(sums[:, 0, 0]) / jnp.sum(cnts[:, 0, 0])


def _cross_entropy_bn(cls_logit, cls_label):
    """Plain mean cross-entropy for (B, K) logits and (B,) labels.

    Tiny tensor -> plain XLA (per review: kernel launch overhead dominates and
    lane width B < 128 would produce masked partial stores)."""
    logp = jax.nn.log_softmax(cls_logit.astype(jnp.float32), axis=1)
    picked = jnp.take_along_axis(logp, cls_label.astype(jnp.int32)[:, None], axis=1)[:, 0]
    return -jnp.mean(picked)


class PartSegLossPallas:
    """JAX/Pallas port of PartSegLoss (no learnable parameters)."""

    def __init__(self, global_labels=True, masked=False, seg_weight=1.0, cls_weight=0.0):
        self.global_labels = global_labels
        self.masked = masked
        self.seg_weight = seg_weight
        self.cls_weight = cls_weight

    def __call__(self, preds, labels):
        seg_logit = preds["seg_logit"]  # (B, C, N)
        if self.global_labels:
            seg_label = labels["gt_label_global"].astype(jnp.int32)
        else:
            seg_label = labels["gt_label"].astype(jnp.int32)

        if not self.masked:
            seg_loss = _cross_entropy_bcn(seg_logit, seg_label, mask=None,
                                          ignore_index0=True) * self.seg_weight
            loss_dict = {"seg_loss": seg_loss}
        else:
            # TODO(synk): if every class of a valid-labeled point is masked out, torch
            # yields inf/nan from -inf logits; the finite -1e30 sentinel yields a huge
            # finite loss instead.
            mask = labels["local_label_map"]
            seg_loss = _cross_entropy_bcn(seg_logit, seg_label, mask=mask,
                                          ignore_index0=True) * self.seg_weight
            loss_dict = {"mask_seg_loss": seg_loss}

        if self.cls_weight > 0.0:
            cls_logit = preds["cls_logit"]               # (B, num_classes)
            cls_label = labels["gt_class_label"].astype(jnp.int32)
            loss_dict["cls_loss"] = _cross_entropy_bn(cls_logit, cls_label) * self.cls_weight
        return loss_dict


# ---------------------------- pure-JAX references ----------------------------

def _reference_ce(seg_logit, seg_label):
    """F.cross_entropy(seg_logit, seg_label, ignore_index=0) for (B, C, N) logits."""
    logp = jax.nn.log_softmax(seg_logit, axis=1)
    picked = jnp.take_along_axis(logp, seg_label[:, None, :], axis=1)[:, 0, :]
    valid = (seg_label != 0).astype(jnp.float32)
    return jnp.sum(-picked * valid) / jnp.sum(valid)


def _reference_ce_cls(logits, labels):
    """F.cross_entropy(logits, labels) for (B, K) logits."""
    logp = jax.nn.log_softmax(logits, axis=1)
    picked = jnp.take_along_axis(logp, labels[:, None], axis=1)[:, 0]
    return -jnp.mean(picked)


if __name__ == "__main__":
    key = jax.random.PRNGKey(0)
    B, C, N = 2, 8, 16           # batch, part classes, points
    NUM_OBJ = 4                  # object classes for the optional cls head
    k1, k2, k3, k4 = jax.random.split(key, 4)

    seg_logit = jax.random.normal(k1, (B, C, N), dtype=jnp.float32)
    seg_label = jax.random.randint(k2, (B, N), 0, C)

    # Default path: seg_loss only.
    loss_fn = PartSegLossPallas()
    out = loss_fn({"seg_logit": seg_logit}, {"gt_label_global": seg_label})
    seg_loss = jax.block_until_ready(out["seg_loss"])
    ref = _reference_ce(seg_logit, seg_label)
    np.testing.assert_allclose(np.asarray(seg_loss), np.asarray(ref), rtol=1e-5, atol=1e-5)

    # Masked path + cls head.
    mask = jnp.ones((B, C), dtype=bool).at[:, C - 1].set(False)   # last part class masked everywhere
    seg_label_m = jax.random.randint(k3, (B, N), 0, C - 1)        # labels never hit the masked class
    cls_logit = jax.random.normal(k4, (B, NUM_OBJ), dtype=jnp.float32)
    cls_label = jnp.array([1, 3], dtype=jnp.int32)

    loss_fn2 = PartSegLossPallas(masked=True, cls_weight=0.5)
    out2 = loss_fn2({"seg_logit": seg_logit, "cls_logit": cls_logit},
                    {"gt_label_global": seg_label_m,
                     "local_label_map": mask,
                     "gt_class_label": cls_label})
    mask_loss = jax.block_until_ready(out2["mask_seg_loss"])
    cls_loss = jax.block_until_ready(out2["cls_loss"])

    ref_mask = _reference_ce(jnp.where(mask[:, :, None], seg_logit, -jnp.inf), seg_label_m)
    ref_cls = _reference_ce_cls(cls_logit, cls_label) * 0.5
    np.testing.assert_allclose(np.asarray(mask_loss), np.asarray(ref_mask), rtol=1e-5, atol=1e-5)
    np.testing.assert_allclose(np.asarray(cls_loss), np.asarray(ref_cls), rtol=1e-5, atol=1e-5)

    print("KERNEL_OK")
</pallas_src>

<mosaic_0001>
module attributes {stable_mosaic.version = 11 : i64} {
  func.func @_ce_kernel(%arg0: i32, %arg1: i32, %arg2: i32, %arg3: memref<2x8x128xf32, #tpu.memory_space<vmem>>, %arg4: memref<2x1x128xi32, #tpu.memory_space<vmem>>, %arg5: memref<1x1x128xf32, #tpu.memory_space<vmem>>, %arg6: memref<1x1x128xf32, #tpu.memory_space<vmem>>, %arg7: memref<1x128xf32, #tpu.memory_space<vmem>>, %arg8: memref<1x128xf32, #tpu.memory_space<vmem>>) attributes {dimension_semantics = [#tpu.dimension_semantics<parallel>, #tpu.dimension_semantics<parallel>, #tpu.dimension_semantics<arbitrary>], iteration_bounds = array<i64: 1, 1, 1>, scalar_prefetch = 0 : i64, scratch_operands = 2 : i64, tpu.core_type = #tpu.core_type<tc>, window_params = [{transform_indices = @transform_0, window_bounds = array<i64: 2, 8, 128>}, {transform_indices = @transform_1, window_bounds = array<i64: 2, 1, 128>}, {transform_indices = @transform_2, window_bounds = array<i64: 1, 1, 128>}, {transform_indices = @transform_3, window_bounds = array<i64: 1, 1, 128>}]} {
    %c0_i32 = arith.constant 0 : i32
    %0 = arith.cmpi eq, %arg2, %c0_i32 : i32
    %1 = arith.extui %0 : i1 to i32
    %c0_i32_0 = arith.constant 0 : i32
    %2 = arith.cmpi ne, %1, %c0_i32_0 : i32
    scf.if %2 {
      %cst_23 = arith.constant 0.000000e+00 : f32
      %49 = vector.broadcast %cst_23 : f32 to vector<1x128xf32>
      %c0_24 = arith.constant 0 : index
      %c0_25 = arith.constant 0 : index
      %50 = vector.load %arg7[%c0_24, %c0_25] : memref<1x128xf32, #tpu.memory_space<vmem>>, vector<1x128xf32>
      tpu.vector_store %arg7[%c0_24, %c0_25], %49 {strides = array<i32>} : memref<1x128xf32, #tpu.memory_space<vmem>>, vector<1x128xf32>,
      %cst_26 = arith.constant 0.000000e+00 : f32
      %51 = vector.broadcast %cst_26 : f32 to vector<1x128xf32>
      %c0_27 = arith.constant 0 : index
      %c0_28 = arith.constant 0 : index
      %52 = vector.load %arg8[%c0_27, %c0_28] : memref<1x128xf32, #tpu.memory_space<vmem>>, vector<1x128xf32>
      tpu.vector_store %arg8[%c0_27, %c0_28], %51 {strides = array<i32>} : memref<1x128xf32, #tpu.memory_space<vmem>>, vector<1x128xf32>,
    } else {
    }
    %c0 = arith.constant 0 : index
    %c0_1 = arith.constant 0 : index
    %c0_2 = arith.constant 0 : index
    %3 = vector.load %arg3[%c0, %c0_1, %c0_2] : memref<2x8x128xf32, #tpu.memory_space<vmem>>, vector<2x8x128xf32>
    %c0_3 = arith.constant 0 : index
    %c0_4 = arith.constant 0 : index
    %c0_5 = arith.constant 0 : index
    %4 = vector.load %arg4[%c0_3, %c0_4, %c0_5] : memref<2x1x128xi32, #tpu.memory_space<vmem>>, vector<2x1x128xi32>
    %cst = arith.constant dense<0xFF800000> : vector<2x128xf32>
    %5 = vector.multi_reduction <maximumf>, %3, %cst [1] : vector<2x8x128xf32> to vector<2x128xf32>
    %6 = vector.shape_cast %5 : vector<2x128xf32> to vector<2x1x128xf32>
    %7 = vector.broadcast %6 : vector<2x1x128xf32> to vector<2x8x128xf32>
    %8 = arith.subf %3, %7 : vector<2x8x128xf32>
    %9 = math.exp %8 : vector<2x8x128xf32>
    %cst_6 = arith.constant dense<0.000000e+00> : vector<2x128xf32>
    %10 = vector.multi_reduction <add>, %9, %cst_6 [1] : vector<2x8x128xf32> to vector<2x128xf32>
    %11 = vector.shape_cast %10 : vector<2x128xf32> to vector<2x1x128xf32>
    %12 = math.log %11 : vector<2x1x128xf32>
    %13 = tpu.iota {dimensions = array<i32: 1>} : vector<1x8x1xi32>
    %14 = vector.broadcast %13 : vector<1x8x1xi32> to vector<2x8x128xi32>
    %15 = vector.broadcast %4 : vector<2x1x128xi32> to vector<2x8x128xi32>
    %16 = arith.cmpi eq, %14, %15 : vector<2x8x128xi32>
    %cst_7 = arith.constant 0.000000e+00 : f32
    %17 = vector.broadcast %cst_7 : f32 to vector<2x8x128xf32>
    %18 = arith.select %16, %8, %17 : vector<2x8x128xi1>, vector<2x8x128xf32>
    %cst_8 = arith.constant dense<0.000000e+00> : vector<2x128xf32>
    %19 = vector.multi_reduction <add>, %18, %cst_8 [1] : vector<2x8x128xf32> to vector<2x128xf32>
    %20 = vector.shape_cast %19 : vector<2x128xf32> to vector<2x1x128xf32>
    %21 = arith.subf %12, %20 : vector<2x1x128xf32>
    %c0_i32_9 = arith.constant 0 : i32
    %22 = vector.broadcast %c0_i32_9 : i32 to vector<2x1x128xi32>
    %23 = arith.cmpi ne, %4, %22 : vector<2x1x128xi32>
    %c1_i32 = arith.constant 1 : i32
    %24 = arith.muli %arg1, %c1_i32 : i32
    %25 = arith.addi %24, %arg2 : i32
    %c128_i32 = arith.constant 128 : i32
    %26 = arith.muli %25, %c128_i32 : i32
    %27 = tpu.iota {dimensions = array<i32: 2>} : vector<1x1x128xi32>
    %28 = vector.broadcast %26 : i32 to vector<1x1x128xi32>
    %29 = arith.addi %28, %27 : vector<1x1x128xi32>
    %c16_i32 = arith.constant 16 : i32
    %30 = vector.broadcast %c16_i32 : i32 to vector<1x1x128xi32>
    %31 = arith.cmpi slt, %29, %30 : vector<1x1x128xi32>
    %32 = vector.broadcast %31 : vector<1x1x128xi1> to vector<2x1x128xi1>
    %33 = arith.andi %23, %32 : vector<2x1x128xi1>
    %c0_10 = arith.constant 0 : index
    %c0_11 = arith.constant 0 : index
    %34 = vector.load %arg7[%c0_10, %c0_11] : memref<1x128xf32, #tpu.memory_space<vmem>>, vector<1x128xf32>
    %cst_12 = arith.constant 0.000000e+00 : f32
    %35 = vector.broadcast %cst_12 : f32 to vector<2x1x128xf32>
    %36 = arith.select %33, %21, %35 : vector<2x1x128xi1>, vector<2x1x128xf32>
    %cst_13 = arith.constant dense<0.000000e+00> : vector<1x128xf32>
    %37 = vector.multi_reduction <add>, %36, %cst_13 [0] : vector<2x1x128xf32> to vector<1x128xf32>
    %38 = arith.addf %34, %37 : vector<1x128xf32>
    %c0_14 = arith.constant 0 : index
    %c0_15 = arith.constant 0 : index
    %39 = vector.load %arg7[%c0_14, %c0_15] : memref<1x128xf32, #tpu.memory_space<vmem>>, vector<1x128xf32>
    tpu.vector_store %arg7[%c0_14, %c0_15], %38 {strides = array<i32>} : memref<1x128xf32, #tpu.memory_space<vmem>>, vector<1x128xf32>,
    %c0_16 = arith.constant 0 : index
    %c0_17 = arith.constant 0 : index
    %40 = vector.load %arg8[%c0_16, %c0_17] : memref<1x128xf32, #tpu.memory_space<vmem>>, vector<1x128xf32>
    %41 = arith.extui %33 : vector<2x1x128xi1> to vector<2x1x128xi32>
    %42 = arith.sitofp %41 : vector<2x1x128xi32> to vector<2x1x128xf32>
    %cst_18 = arith.constant dense<0.000000e+00> : vector<1x128xf32>
    %43 = vector.multi_reduction <add>, %42, %cst_18 [0] : vector<2x1x128xf32> to vector<1x128xf32>
    %44 = arith.addf %40, %43 : vector<1x128xf32>
    %c0_19 = arith.constant 0 : index
    %c0_20 = arith.constant 0 : index
    %45 = vector.load %arg8[%c0_19, %c0_20] : memref<1x128xf32, #tpu.memory_space<vmem>>, vector<1x128xf32>
    tpu.vector_store %arg8[%c0_19, %c0_20], %44 {strides = array<i32>} : memref<1x128xf32, #tpu.memory_space<vmem>>, vector<1x128xf32>,
    %c0_i32_21 = arith.constant 0 : i32
    %46 = arith.cmpi eq, %arg2, %c0_i32_21 : i32
    %47 = arith.extui %46 : i1 to i32
    %c0_i32_22 = arith.constant 0 : i32
    %48 = arith.cmpi ne, %47, %c0_i32_22 : i32
    scf.if %48 {
      %cst_23 = arith.constant 0.000000e+00 : f32
      %49 = vector.broadcast %cst_23 : f32 to vector<1x1x128xf32>
      %c0_24 = arith.constant 0 : index
      %c0_25 = arith.constant 0 : index
      %50 = vector.load %arg7[%c0_24, %c0_25] : memref<1x128xf32, #tpu.memory_space<vmem>>, vector<1x128xf32>
      %51 = vector.shape_cast %50 : vector<1x128xf32> to vector<1x1x128xf32>
      %cst_26 = arith.constant dense<0.000000e+00> : vector<1xf32>
      %52 = vector.multi_reduction <add>, %51, %cst_26 [1, 2] : vector<1x1x128xf32> to vector<1xf32>
      %53 = vector.shape_cast %52 : vector<1xf32> to vector<1x1x1xf32>
      %54 = vector.extract %53[0, 0, 0] : f32 from vector<1x1x1xf32>
      %55 = vector.broadcast %54 : f32 to vector<1x1x128xf32>
      %56 = arith.addf %49, %55 : vector<1x1x128xf32>
      %c0_27 = arith.constant 0 : index
      %c0_28 = arith.constant 0 : index
      %c0_29 = arith.constant 0 : index
      %57 = vector.load %arg5[%c0_27, %c0_28, %c0_29] : memref<1x1x128xf32, #tpu.memory_space<vmem>>, vector<1x1x128xf32>
      tpu.vector_store %arg5[%c0_27, %c0_28, %c0_29], %56 {strides = array<i32>} : memref<1x1x128xf32, #tpu.memory_space<vmem>>, vector<1x1x128xf32>,
      %cst_30 = arith.constant 0.000000e+00 : f32
      %58 = vector.broadcast %cst_30 : f32 to vector<1x1x128xf32>
      %c0_31 = arith.constant 0 : index
      %c0_32 = arith.constant 0 : index
      %59 = vector.load %arg8[%c0_31, %c0_32] : memref<1x128xf32, #tpu.memory_space<vmem>>, vector<1x128xf32>
      %60 = vector.shape_cast %59 : vector<1x128xf32> to vector<1x1x128xf32>
      %cst_33 = arith.constant dense<0.000000e+00> : vector<1xf32>
      %61 = vector.multi_reduction <add>, %60, %cst_33 [1, 2] : vector<1x1x128xf32> to vector<1xf32>
      %62 = vector.shape_cast %61 : vector<1xf32> to vector<1x1x1xf32>
      %63 = vector.extract %62[0, 0, 0] : f32 from vector<1x1x1xf32>
      %64 = vector.broadcast %63 : f32 to vector<1x1x128xf32>
      %65 = arith.addf %58, %64 : vector<1x1x128xf32>
      %c0_34 = arith.constant 0 : index
      %c0_35 = arith.constant 0 : index
      %c0_36 = arith.constant 0 : index
      %66 = vector.load %arg6[%c0_34, %c0_35, %c0_36] : memref<1x1x128xf32, #tpu.memory_space<vmem>>, vector<1x1x128xf32>
      tpu.vector_store %arg6[%c0_34, %c0_35, %c0_36], %65 {strides = array<i32>} : memref<1x1x128xf32, #tpu.memory_space<vmem>>, vector<1x1x128xf32>,
    } else {
    }
    return
  }
  func.func @transform_0(%arg0: i32, %arg1: i32, %arg2: i32) -> (i32, i32, i32) {
    %c1_i32 = arith.constant 1 : i32
    %0 = arith.muli %arg1, %c1_i32 : i32
    %1 = arith.addi %0, %arg2 : i32
    %c0_i32 = arith.constant 0 : i32
    %c0_i32_0 = arith.constant 0 : i32
    return %arg0, %c0_i32, %1 : i32, i32, i32
  }
  func.func @transform_1(%arg0: i32, %arg1: i32, %arg2: i32) -> (i32, i32, i32) {
    %c1_i32 = arith.constant 1 : i32
    %0 = arith.muli %arg1, %c1_i32 : i32
    %1 = arith.addi %0, %arg2 : i32
    %c0_i32 = arith.constant 0 : i32
    %c0_i32_0 = arith.constant 0 : i32
    return %arg0, %c0_i32, %1 : i32, i32, i32
  }
  func.func @transform_2(%arg0: i32, %arg1: i32, %arg2: i32) -> (i32, i32, i32) {
    %c1_i32 = arith.constant 1 : i32
    %0 = arith.muli %arg0, %c1_i32 : i32
    %1 = arith.addi %0, %arg1 : i32
    %c0_i32 = arith.constant 0 : i32
    %c0_i32_0 = arith.constant 0 : i32
    %c0_i32_1 = arith.constant 0 : i32
    return %1, %c0_i32, %c0_i32_0 : i32, i32, i32
  }
  func.func @transform_3(%arg0: i32, %arg1: i32, %arg2: i32) -> (i32, i32, i32) {
    %c1_i32 = arith.constant 1 : i32
    %0 = arith.muli %arg0, %c1_i32 : i32
    %1 = arith.addi %0, %arg1 : i32
    %c0_i32 = arith.constant 0 : i32
    %c0_i32_0 = arith.constant 0 : i32
    %c0_i32_1 = arith.constant 0 : i32
    return %1, %c0_i32, %c0_i32_0 : i32, i32, i32
  }
}

</mosaic_0001>

<bundles_post_ra>
// kernel: tpu_custom_call.1
= control target key start
LH: loop header
LB: loop body
LE: loop exit
PB: predicated region body
PF: predicated region fallthrough
CT: control target
= control target key end

     0   :  { %9 = vsyncpa [#allocation5], 0  ;;  %s404_s0 = inlined_call_operand.hbm [shape: f32[2,8,128], index: 0, kind: input, shape index: {}]   ;;  %s405_s1 = inlined_call_operand.vmem [shape: s32[2,1,128], index: 1, kind: input, shape index: {}]   ;;  %s406_s2 = inlined_call_operand.hbm [shape: f32[1,1,128], index: 2, kind: output, shape index: {0}]   ;;  %s407_s3 = inlined_call_operand.hbm [shape: f32[1,1,128], index: 3, kind: output, shape index: {1}]  }
   0x1   :  { %10 = vsyncpa [#allocation6], 0 }
   0x2   :  { %11 = vsyncpa [#allocation9], 0  ;;  %s314_s12 = smov [#allocation4]   ;;  %s242_s16 = scalar_lea.hbm %s404_s0, 256 }
   0x3   :  { %s20_s13 = sshll.u32 %s314_s12, 4  ;;  %p243_p0 = scmp.ne.s32.totalorder %s404_s0, %s242_s16  ;;  %s21_s13 = int_to_ptr.vmem [resolvable:$true] %s20_s13 }
   0x4   :  { %p246_p1 = scmp.lt.u32.totalorder %s242_s16, %s404_s0 }
   0x6   :  { %p248_p2 = pnand %p246_p1, %p243_p0 }
   0x8   :  { %251 = shalt.err (!%p248_p2)
}
   0x9   :  { %s252_s21 = scalar_lea.vmem %s21_s13, 256  ;;  %p257_p4 = scmp.lt.s32.totalorder %s21_s13, %s21_s13 }
   0xa   :  { %p253_p3 = scmp.ne.s32.totalorder %s21_s13, %s252_s21  ;;  %p258_p5 = scmp.lt.s32.totalorder %s252_s21, %s252_s21 }
   0xc   :  { %p259_p6 = por %p258_p5, %p257_p4 }
   0xe   :  { %p260_p7 = pnand %p259_p6, %p253_p3 }
  0x10   :  { %263 = shalt.err (!%p260_p7)
}
  0x11   :  { %s315_s22 = smov 128   ;;  %s316_s23 = smov 8  }
  0x12   :  { %26 = dma.hbm_to_vmem [thread:$0]  %s404_s0, 256, %s21_s13, [#allocation5], %s315_s22, %s315_s22, %s316_s23  }
  0x13   :  { %308 = dma.done.wait [#allocation5], 256  }
  0x14   :  { %309 = vsyncadd [#allocation5], 4294967040  ;;  %v93_v0 = vlaneseq  ;;  %v317_v1 = vmov 0.0   ;;  %v55_v3 = vld [vmem:[#allocation4] sm:$0xff]  ;;  %v56_v4 = vld [vmem:[#allocation4 + $0x8] sm:$0xff]  ;;  %vm137_vm5 = vcmask 1040384  }
  0x15   :  { %53 = vst [vmem:[#allocation2] sm:$0x1] %v317_v1  ;;  %54 = vst [vmem:[#allocation3] sm:$0x1] %v317_v1  ;;  %v57_v5 = vld [vmem:[%s405_s1] sm:$0x1] }
  0x16   :  { %v126_v2 = vand.u32 127, %v93_v0  ;;  %v58_v6 = vld [vmem:[%s405_s1 + $0x1] sm:$0x1]  ;;  %v59_v7 = vrot.slane %v55_v3, 4  ;;  %v65_v8 = vrot.slane %v56_v4, 4  ;;  %vm121_vm1 = vcmp.ne.s32.totalorder %v57_v5, 0 }
  0x17   :  { %vm122_vm2 = vcmp.ne.s32.totalorder %v58_v6, 0  ;;  %v94_v28 = vshrl.u32 %v93_v0, 7  ;;  %s318_s0 = smov [#allocation7]   ;;  %s319_s4 = smov [#allocation8]  }
  0x18   :  { %vm129_vm0 = vcmp.lt.s32.totalorder %v126_v2, 16  ;;  %v60_v10 = vmax.f32 %v55_v3, %v59_v7  ;;  %v66_v11 = vmax.f32 %v56_v4, %v65_v8  ;;  %s193_s1 = sshll.u32 %s318_s0, 4  ;;  %s206_s5 = sshll.u32 %s319_s4, 4  ;;  %s194_s1 = int_to_ptr.vmem [resolvable:$true] %s193_s1  ;;  %s207_s5 = int_to_ptr.vmem [resolvable:$true] %s206_s5 }
  0x19   :  { %vm358_vm3 = vmand %vm121_vm1, %vm129_vm0  ;;  %v97_v33 = vsub.s32 0, %v94_v28  ;;  %s264_s6 = scalar_lea.vmem %s194_s1, 16  ;;  %s268_s7 = scalar_lea.vmem %s194_s1, 32 }
  0x1a   :  { %vm362_vm4 = vmand %vm122_vm2, %vm129_vm0  ;;  %v222_v13 = vsel %vm358_vm3, 1.0, %v317_v1  ;;  %v61_v16 = vrot.slane %v60_v10, 2  ;;  %v67_v17 = vrot.slane %v66_v11, 2  ;;  %p265_p8 = scmp.ne.s32.totalorder %s194_s1, %s264_s6  ;;  %p269_p9 = scmp.lt.s32.totalorder %s194_s1, %s194_s1 }
  0x1b   :  { %v223_v14 = vsel %vm362_vm4, 1.0, %v317_v1  ;;  %v148_v15 = vsel %vm137_vm5, %v222_v13, 0.0  ;;  %v98_v34 = vrot.slane %v57_v5, %v97_v33  ;;  %v102_v35 = vrot.slane %v58_v6, %v97_v33  ;;  %p270_p10 = scmp.lt.s32.totalorder %s268_s7, %s264_s6 }
  0x1c   :  { %v143_v18 = vld [vmem:[#allocation3] sm:$0x1]  ;;  %v149_v19 = vsel %vm137_vm5, %v223_v14, 0.0  ;;  %v62_v21 = vmax.f32 %v60_v10, %v61_v16  ;;  %v68_v22 = vmax.f32 %v66_v11, %v67_v17  ;;  %v134_v10 = vld [vmem:[#allocation2] sm:$0x1] }
  0x1d   :  { %v150_v20 = vadd.f32 %v149_v19, %v148_v15  ;;  %vm103_vm6 = vcmp.eq.s32.totalorder %v94_v28, %v98_v34  ;;  %vm104_vm7 = vcmp.eq.s32.totalorder %v94_v28, %v102_v35  ;;  %p271_p11 = por %p270_p10, %p269_p9 }
  0x1e   :  { %v63_v24 = vrot.slane %v62_v21, 1  ;;  %v69_v25 = vrot.slane %v68_v22, 1 }
  0x1f   :  { %v151_v23 = vadd.f32 %v150_v20, %v143_v18  ;;  %p272_p12 = pnand %p271_p11, %p265_p8 }
  0x20   :  { %v64_v26 = vmax.f32 %v62_v21, %v63_v24  ;;  %v70_v27 = vmax.f32 %v68_v22, %v69_v25 }
  0x21   :  { %152 = vst [vmem:[#allocation3] sm:$0x1] %v151_v23 }
  0x22   :  { %v71_v29 = vsub.f32 %v55_v3, %v64_v26  ;;  %v72_v30 = vsub.f32 %v56_v4, %v70_v27 }
  0x24   :  { %v73_v31 = vmul.f32 1.442695, %v71_v29  ;;  %v75_v32 = vmul.f32 1.442695, %v72_v30  ;;  %v105_v36 = vsel %vm103_vm6, %v71_v29, 0.0  ;;  %v106_v38 = vsel %vm104_vm7, %v72_v30, 0.0 }
  0x25   :  { %v107_v42 = vrot.slane %v105_v36, 4  ;;  %v113_v44 = vrot.slane %v106_v38, 4 }
  0x26   :  { %234 = vpow2.f32 %v73_v31 }
  0x27   :  { %236 = vpow2.f32 %v75_v32  ;;  %v108_v48 = vadd.f32 %v107_v42, %v105_v36  ;;  %v114_v50 = vadd.f32 %v113_v44, %v106_v38 }
  0x28   :  { %v170_v16 = vld [vmem:[#allocation3] sm:$0x1] }
  0x29   :  { %v109_v54 = vrot.slane %v108_v48, 2  ;;  %v115_v56 = vrot.slane %v114_v50, 2  ;;  %v171_v18 = vsel %vm137_vm5, %v170_v16, 0.0 }
  0x2b   :  { %v110_v58 = vadd.f32 %v109_v54, %v108_v48  ;;  %v116_v59 = vadd.f32 %v115_v56, %v114_v50 }
  0x2d   :  { %v111_v60 = vrot.slane %v110_v58, 1  ;;  %v117_v61 = vrot.slane %v116_v59, 1 }
  0x2f   :  { %v112_v62 = vadd.f32 %v111_v60, %v110_v58  ;;  %v118_v0 = vadd.f32 %v117_v61, %v116_v59 }
  0x30   :  { %v235_v37 = vpop.eup %234 }
  0x31   :  { %v237_v39 = vpop.eup %236  ;;  %v77_v40 = vrot.slane %v235_v37, 4 }
  0x32   :  { %v83_v41 = vrot.slane %v237_v39, 4 }
  0x33   :  { %v78_v43 = vadd.f32 %v235_v37, %v77_v40 }
  0x34   :  { %v84_v45 = vadd.f32 %v237_v39, %v83_v41 }
  0x35   :  { %v79_v46 = vrot.slane %v78_v43, 2 }
  0x36   :  { %v85_v47 = vrot.slane %v84_v45, 2 }
  0x37   :  { %v80_v49 = vadd.f32 %v79_v46, %v78_v43 }
  0x38   :  { %v86_v51 = vadd.f32 %v85_v47, %v84_v45 }
  0x39   :  { %v81_v52 = vrot.slane %v80_v49, 1 }
  0x3a   :  { %v87_v53 = vrot.slane %v86_v51, 1 }
  0x3b   :  { %v82_v55 = vadd.f32 %v81_v52, %v80_v49 }
  0x3c   :  { %v88_v57 = vadd.f32 %v87_v53, %v86_v51 }
  0x3d   :  { %238 = vlog2.f32 %v82_v55 }
  0x3e   :  { %240 = vlog2.f32 %v88_v57 }
  0x47   :  { %v239_v63 = vpop.eup %238 }
  0x48   :  { %v241_v1 = vpop.eup %240  ;;  %v90_v2 = vmul.f32 0.6931472, %v239_v63 }
  0x49   :  { %v92_v3 = vmul.f32 0.6931472, %v241_v1 }
  0x4a   :  { %v119_v4 = vsub.f32 %v90_v2, %v112_v62 }
  0x4b   :  { %v120_v5 = vsub.f32 %v92_v3, %v118_v0 }
  0x4c   :  { %v135_v6 = vsel %vm358_vm3, %v119_v4, 0.0 }
  0x4d   :  { %v136_v7 = vsel %vm362_vm4, %v120_v5, 0.0  ;;  %v138_v8 = vsel %vm137_vm5, %v135_v6, 0.0 }
  0x4e   :  { %v139_v11 = vsel %vm137_vm5, %v136_v7, 0.0 }
  0x4f   :  { %v140_v13 = vadd.f32 %v139_v11, %v138_v8 }
  0x51   :  { %v141_v14 = vadd.f32 %v140_v13, %v134_v10 }
  0x53   :  { %142 = vst [vmem:[#allocation2] sm:$0x1] %v141_v14 }
  0x5a   :  { %v156_v15 = vld [vmem:[#allocation2] sm:$0x1] }
  0x5b   :  { %v157_v17 = vsel %vm137_vm5, %v156_v15, 0.0 }
  0x5c   :  { %158 = vadd.xlane.f32.xlu0 %v157_v17 }
  0x60   :  { %172 = vadd.xlane.f32.xlu0 %v171_v18 }
  0xe9   :  { %v159_v9 = vpop.xlane.xlu0 %158 }
  0xea   :  { %v160_v19 = vrot.slane %v159_v9, 4 }
  0xec   :  { %v161_v12 = vadd.f32 %v160_v19, %v159_v9 }
  0xed   :  { %v173_v20 = vpop.xlane.xlu0 %172 }
  0xee   :  { %v162_v21 = vrot.slane %v161_v12, 2  ;;  %v174_v22 = vrot.slane %v173_v20, 4 }
  0xf0   :  { %v175_v23 = vadd.f32 %v174_v22, %v173_v20  ;;  %v163_v24 = vadd.f32 %v162_v21, %v161_v12 }
  0xf2   :  { %v176_v25 = vrot.slane %v175_v23, 2  ;;  %v164_v26 = vrot.slane %v163_v24, 1 }
  0xf4   :  { %v177_v27 = vadd.f32 %v176_v25, %v175_v23  ;;  %v165_v28 = vadd.f32 %v164_v26, %v163_v24 }
  0xf6   :  { %224 = vpush %v165_v28  ;;  %v178_v29 = vrot.slane %v177_v27, 1 }
  0xf8   :  { %v179_v30 = vadd.f32 %v178_v29, %v177_v27 }
  0xfa   :  { %226 = vpush %v179_v30 }
 0x127   :  { %s225_s30 = spop %224 }
 0x128   :  { %v167_v31 = vstv %s225_s30 }
 0x129   :  { %169 = vst [vmem:[#allocation7] sm:$0x1] %v167_v31 }
 0x12a   :  { %275 = shalt.err (!%p272_p12)
}
 0x12b   :  { %s276_s10 = scalar_lea.hbm %s406_s2, 16 }
 0x12c   :  { %p277_p13 = scmp.ne.s32.totalorder %s406_s2, %s276_s10  ;;  %p280_p0 = scmp.lt.u32.totalorder %s276_s10, %s406_s2 }
 0x12e   :  { %p282_p1 = pnand %p280_p0, %p277_p13 }
 0x130   :  { %285 = shalt.err (!%p282_p1)
}
 0x131   :  { %196 = dma.vmem_to_hbm [thread:$0]  %s194_s1, 16, %s406_s2, [#allocation6]  }
 0x132   :  { %s227_s17 = spop %226  ;;  %s286_s18 = scalar_lea.vmem %s207_s5, 16 }
 0x133   :  { %v181_v32 = vstv %s227_s17  ;;  %p287_p2 = scmp.ne.s32.totalorder %s207_s5, %s286_s18  ;;  %s290_s19 = scalar_lea.vmem %s207_s5, 32 }
 0x134   :  { %183 = vst [vmem:[#allocation8] sm:$0x1] %v181_v32  ;;  %p291_p3 = scmp.lt.s32.totalorder %s207_s5, %s207_s5  ;;  %p292_p4 = scmp.lt.s32.totalorder %s290_s19, %s286_s18 }
 0x136   :  { %p293_p5 = por %p292_p4, %p291_p3 }
 0x138   :  { %p294_p6 = pnand %p293_p5, %p287_p2 }
 0x13a   :  { %297 = shalt.err (!%p294_p6)
}
 0x13b   :  { %s298_s22 = scalar_lea.hbm %s407_s3, 16 }
 0x13c   :  { %p299_p7 = scmp.ne.s32.totalorder %s407_s3, %s298_s22  ;;  %p302_p8 = scmp.lt.u32.totalorder %s298_s22, %s407_s3 }
 0x13e   :  { %p304_p9 = pnand %p302_p8, %p299_p7 }
 0x140   :  { %307 = shalt.err (!%p304_p9)
}
 0x141   :  { %209 = dma.vmem_to_hbm [thread:$0]  %s207_s5, 16, %s407_s3, [#allocation9]  }
 0x142   :  { %310 = dma.done.wait [#allocation6], 16  }
 0x143   :  { %311 = vsyncadd [#allocation6], 4294967280 }
 0x144   :  { %312 = dma.done.wait [#allocation9], 16  }
 0x145   :  { %313 = vsyncadd [#allocation9], 4294967280 }
 0x146   :  { %216 = vsyncpa [#allocation5], 1 }
 0x147   :  { %217 = vsyncpa [#allocation6], 1 }
 0x148   :  { %218 = vsyncpa [#allocation9], 1 }

</bundles_post_ra>
